<compile_context>
chip_gen: v5e
topology: v5e:2x2
jax: 0.10.0
libtpu: 0.0.40
codegen_flags: <defaults>
</compile_context>

<pallas_src>
import jax
import jax.numpy as jnp
from jax.experimental import pallas as pl
from jax.experimental.pallas import tpu as pltpu


def _coord_att_kernel(x_ref, p2_ref, w1_ref, b1_ref, w2_ref, b2_ref,
                      bh_ref, bw_ref, out_ref):
    """One grid step: a (nb, C*HW) slab (rows = images, lanes = C*H*W)."""
    hw = bh_ref.shape[1]
    c = x_ref.shape[1] // hw

    # --- coordinate pooling: one MXU matmul against a fixed one-hot matrix --
    #   pooled[b, s*C + ch] = mean-pool of channel ch at concat-spatial s.
    pooled = jnp.dot(x_ref[...], p2_ref[...],
                     preferred_element_type=jnp.float32)            # (nb, S*C)

    # --- conv1 (1x1, C -> mip) with folded BN/bias, batched over images -----
    # w1_ref is lane-block-diagonal (S*C, S*mip): fixed size, indep. of nb.
    y = jnp.dot(pooled, w1_ref[...],
                preferred_element_type=jnp.float32) + b1_ref[...]   # (nb, S*mip)

    # --- h_swish: y * relu6(y + 3) / 6 --------------------------------------
    y = y * jnp.clip(y + 3.0, 0.0, 6.0) * (1.0 / 6.0)

    # --- conv_h / conv_w (1x1, mip -> 1) + sigmoid ---------------------------
    a = jax.nn.sigmoid(
        jnp.dot(y, w2_ref[...], preferred_element_type=jnp.float32)
        + b2_ref[...])                                              # (nb, S)

    # --- per-image attention row over the flattened spatial axis ------------
    #   attn[b, p] = a_h[b, row(p)] * a_w[b, col(p)]
    attn = (jnp.dot(a, bh_ref[...], preferred_element_type=jnp.float32)
            * jnp.dot(a, bw_ref[...], preferred_element_type=jnp.float32))
    attn = attn.astype(out_ref.dtype)                               # (nb, HW)

    # --- apply attention: dense multiply per channel chunk ------------------
    # Chunk offsets are multiples of HW (>= 128) -> aligned, unmasked stores.
    for cc in range(c):
        sl = pl.ds(cc * hw, hw)
        out_ref[:, sl] = (x_ref[:, sl] * attn).astype(out_ref.dtype)


def _pick_block_rows(n_rows, row_bytes, target_bytes, min_grid=4):
    """Images per grid step: large blocks, but keep a few grid steps for
    pipelining / megacore and keep the row count sublane-dense (mult. of 8)."""
    nb = max(1, int(target_bytes) // max(1, int(row_bytes)))
    if n_rows >= min_grid:
        nb = min(nb, -(-n_rows // min_grid))   # keep at least `min_grid` steps
    nb = min(nb, n_rows)
    if n_rows >= 8:
        nb = max(8, (nb // 8) * 8)             # sublane-dense blocks
    return int(nb)


def coord_att(x, w1, b1, bn_scale, bn_bias, wh, bh, ww, bw,
              *, target_block_bytes=4 << 20):
    """CoordAtt forward.  x: (N, C, H, W); conv1 weight (mip, C), bias (mip, 1);
    bn1 folded scale/bias (mip, 1); conv_h/conv_w weights (1, mip), biases (1, 1)."""
    n, c, h, w = x.shape
    mip = w1.shape[0]
    hw, s_dim, chw = h * w, h + w, c * h * w
    f32 = jnp.float32

    # ---- fold BN (inference stats) + conv1 bias into conv1 -----------------
    w1f = (w1 * bn_scale).astype(f32)                          # (mip, C)
    b1f = (b1 * bn_scale + bn_bias).reshape(-1).astype(f32)    # (mip,)

    # ---- fixed-size constant matrices (independent of batch size) ----------
    row = jnp.arange(hw) // w
    col = jnp.arange(hw) % w
    pool_h = (row[:, None] == jnp.arange(h)[None, :]).astype(f32) / w    # (HW, H)
    pool_w = (col[:, None] == jnp.arange(w)[None, :]).astype(f32) / h    # (HW, W)
    pool = jnp.concatenate([pool_h, pool_w], axis=1)                     # (HW, S)

    eye_c = jnp.eye(c, dtype=f32)
    eye_s = jnp.eye(s_dim, dtype=f32)

    # Pooling matrix (C*HW, S*C): P2[ch*HW+p, s*C+ch'] = d(ch,ch') * pool[p,s]
    p2 = jnp.einsum('ij,ps->ipsj', eye_c, pool).reshape(chw, s_dim * c)
    p2 = p2.astype(x.dtype)          # MXU takes the input dtype, f32 accumulate

    # conv1 as lane-block-diagonal weight (S*C, S*mip) + bias row
    w1_bd = jnp.einsum('st,mc->sctm', eye_s, w1f).reshape(s_dim * c, s_dim * mip)
    b1_row = jnp.tile(b1f, s_dim).reshape(1, s_dim * mip)

    # conv_h / conv_w as lane-block-diagonal weight (S*mip, S) + bias row
    whw = jnp.concatenate([jnp.broadcast_to(wh.reshape(1, mip), (h, mip)),
                           jnp.broadcast_to(ww.reshape(1, mip), (w, mip))], axis=0)
    w2_bd = jnp.einsum('st,sm->smt', eye_s, whw).reshape(s_dim * mip, s_dim)
    b2_row = jnp.concatenate([jnp.full((h,), bh.reshape(()), f32),
                              jnp.full((w,), bw.reshape(()), f32)]).reshape(1, s_dim)

    # Attention broadcast matrices over the flattened HW axis
    bh_mat = jnp.concatenate(
        [(jnp.arange(h)[:, None] == row[None, :]).astype(f32),
         jnp.zeros((w, hw), f32)], axis=0)                               # (S, HW)
    bw_mat = jnp.concatenate(
        [jnp.zeros((h, hw), f32),
         (jnp.arange(w)[:, None] == col[None, :]).astype(f32)], axis=0)  # (S, HW)

    # ---- image-major 2-D layout: rows = images, lanes = C*H*W ---------------
    x2 = x.reshape(n, chw)
    nb = _pick_block_rows(n, chw * x.dtype.itemsize, target_block_bytes)
    n_pad = -(-n // nb) * nb
    if n_pad != n:
        x2 = jnp.pad(x2, ((0, n_pad - n), (0, 0)))      # zero rows -> zero out

    fixed = lambda i: (0, 0)
    out2 = pl.pallas_call(
        _coord_att_kernel,
        out_shape=jax.ShapeDtypeStruct((n_pad, chw), x.dtype),
        grid_spec=pltpu.PrefetchScalarGridSpec(
            num_scalar_prefetch=0,
            grid=(n_pad // nb,),
            in_specs=[
                pl.BlockSpec((nb, chw), lambda i: (i, 0)),        # x slab
                pl.BlockSpec((chw, s_dim * c), fixed),            # pooling matrix
                pl.BlockSpec((s_dim * c, s_dim * mip), fixed),    # conv1 (BN folded)
                pl.BlockSpec((1, s_dim * mip), fixed),            # conv1 bias (folded)
                pl.BlockSpec((s_dim * mip, s_dim), fixed),        # conv_h/conv_w weight
                pl.BlockSpec((1, s_dim), fixed),                  # conv_h/conv_w bias
                pl.BlockSpec((s_dim, hw), fixed),                 # a_h broadcast matrix
                pl.BlockSpec((s_dim, hw), fixed),                 # a_w broadcast matrix
            ],
            out_specs=pl.BlockSpec((nb, chw), lambda i: (i, 0)),
        ),
        compiler_params=pltpu.CompilerParams(
            dimension_semantics=("parallel",),
            vmem_limit_bytes=32 * 1024 * 1024),
    )(x2, p2, w1_bd, b1_row, w2_bd, b2_row, bh_mat, bw_mat)

    return out2[:n].reshape(n, c, h, w)


def coord_att_ref(x, w1, b1, bn_scale, bn_bias, wh, bh, ww, bw):
    """Pure-JAX reference with identical semantics (for checking)."""
    n, c, h, w = x.shape
    x_h = jnp.mean(x, axis=3)                       # (n, c, h)
    x_w = jnp.mean(x, axis=2)                       # (n, c, w)
    y = jnp.concatenate([x_h, x_w], axis=2)         # (n, c, h+w)
    y = jnp.einsum('mc,ncs->nms', w1, y) + b1[None]
    y = y * bn_scale[None] + bn_bias[None]
    y = y * jnp.clip(y + 3.0, 0.0, 6.0) / 6.0
    yh, yw = y[:, :, :h], y[:, :, h:]
    a_h = jax.nn.sigmoid(jnp.einsum('om,nms->nos', wh, yh) + bh[None])  # (n,1,h)
    a_w = jax.nn.sigmoid(jnp.einsum('om,nms->nos', ww, yw) + bw[None])  # (n,1,w)
    return x * a_w[:, :, None, :] * a_h[:, :, :, None]


if __name__ == "__main__":
    # Module config mirroring CoordAtt(inp=4, oup=1, reduction=32)
    n, c, h, w = 2, 4, 16, 16
    inp, reduction = c, 32
    mip = max(8, inp // reduction)                  # = 8
    eps = 1e-5

    key = jax.random.PRNGKey(0)
    ks = jax.random.split(key, 10)

    x = jax.random.normal(ks[0], (n, c, h, w), dtype=jnp.float32)

    # conv1: Conv2d(inp, mip, 1) -> weight (mip, inp), bias (mip, 1)
    w1 = jax.random.normal(ks[1], (mip, c), dtype=jnp.float32) * 0.2
    b1 = jax.random.normal(ks[2], (mip, 1), dtype=jnp.float32) * 0.1
    # bn1: BatchNorm2d(mip), folded into scale/bias (inference semantics)
    gamma = 1.0 + 0.1 * jax.random.normal(ks[3], (mip, 1), dtype=jnp.float32)
    beta = 0.1 * jax.random.normal(ks[4], (mip, 1), dtype=jnp.float32)
    running_mean = 0.05 * jax.random.normal(ks[5], (mip, 1), dtype=jnp.float32)
    running_var = jnp.abs(1.0 + 0.1 * jax.random.normal(ks[6], (mip, 1),
                                                        dtype=jnp.float32))
    bn_scale = gamma / jnp.sqrt(running_var + eps)
    bn_bias = beta - running_mean * bn_scale
    # conv_h / conv_w: Conv2d(mip, 1, 1) -> weight (1, mip), bias (1, 1)
    wh = jax.random.normal(ks[7], (1, mip), dtype=jnp.float32) * 0.2
    bh = jax.random.normal(ks[8], (1, 1), dtype=jnp.float32) * 0.1
    ww = jax.random.normal(ks[9], (1, mip), dtype=jnp.float32) * 0.2
    bw = jnp.zeros((1, 1), dtype=jnp.float32)

    out = coord_att(x, w1, b1, bn_scale, bn_bias, wh, bh, ww, bw)
    out = jax.block_until_ready(out)

    ref = coord_att_ref(x, w1, b1, bn_scale, bn_bias, wh, bh, ww, bw)
    assert out.shape == (n, c, h, w)
    assert jnp.allclose(out, ref, atol=1e-4, rtol=1e-4), "mismatch vs JAX reference"

    print("KERNEL_OK")
</pallas_src>

<mosaic_0001>
module attributes {stable_mosaic.version = 11 : i64} {
  func.func @_coord_att_kernel(%arg0: i32, %arg1: memref<2x1024xf32, #tpu.memory_space<vmem>>, %arg2: memref<1024x128xf32, #tpu.memory_space<vmem>>, %arg3: memref<128x256xf32, #tpu.memory_space<vmem>>, %arg4: memref<1x256xf32, #tpu.memory_space<vmem>>, %arg5: memref<256x32xf32, #tpu.memory_space<vmem>>, %arg6: memref<1x32xf32, #tpu.memory_space<vmem>>, %arg7: memref<32x256xf32, #tpu.memory_space<vmem>>, %arg8: memref<32x256xf32, #tpu.memory_space<vmem>>, %arg9: memref<2x1024xf32, #tpu.memory_space<vmem>>) attributes {dimension_semantics = [#tpu.dimension_semantics<parallel>], iteration_bounds = array<i64: 1>, scalar_prefetch = 0 : i64, scratch_operands = 0 : i64, tpu.core_type = #tpu.core_type<tc>, window_params = [{transform_indices = @transform_0, window_bounds = array<i64: 2, 1024>}, {pipeline_mode = #tpu.pipeline_mode<synchronous>, transform_indices = @transform_1, window_bounds = array<i64: 1024, 128>}, {pipeline_mode = #tpu.pipeline_mode<synchronous>, transform_indices = @transform_2, window_bounds = array<i64: 128, 256>}, {pipeline_mode = #tpu.pipeline_mode<synchronous>, transform_indices = @transform_3, window_bounds = array<i64: 1, 256>}, {pipeline_mode = #tpu.pipeline_mode<synchronous>, transform_indices = @transform_4, window_bounds = array<i64: 256, 32>}, {pipeline_mode = #tpu.pipeline_mode<synchronous>, transform_indices = @transform_5, window_bounds = array<i64: 1, 32>}, {pipeline_mode = #tpu.pipeline_mode<synchronous>, transform_indices = @transform_6, window_bounds = array<i64: 32, 256>}, {pipeline_mode = #tpu.pipeline_mode<synchronous>, transform_indices = @transform_7, window_bounds = array<i64: 32, 256>}, {transform_indices = @transform_8, window_bounds = array<i64: 2, 1024>}]} {
    %c0 = arith.constant 0 : index
    %c0_0 = arith.constant 0 : index
    %0 = vector.load %arg1[%c0, %c0_0] : memref<2x1024xf32, #tpu.memory_space<vmem>>, vector<2x1024xf32>
    %c0_1 = arith.constant 0 : index
    %c0_2 = arith.constant 0 : index
    %1 = vector.load %arg2[%c0_1, %c0_2] : memref<1024x128xf32, #tpu.memory_space<vmem>>, vector<1024x128xf32>
    %cst = arith.constant dense<0.000000e+00> : vector<2x128xf32>
    %2 = tpu.matmul %0, %1, %cst {dimension_numbers = #tpu.dot_dimension_numbers<[1], [0], [0], [1], [0, 0, 1, 1], [], []>} : vector<2x1024xf32>, vector<1024x128xf32>, vector<2x128xf32> -> vector<2x128xf32>
    %c0_3 = arith.constant 0 : index
    %c0_4 = arith.constant 0 : index
    %3 = vector.load %arg3[%c0_3, %c0_4] : memref<128x256xf32, #tpu.memory_space<vmem>>, vector<128x256xf32>
    %cst_5 = arith.constant dense<0.000000e+00> : vector<2x256xf32>
    %4 = tpu.matmul %2, %3, %cst_5 {dimension_numbers = #tpu.dot_dimension_numbers<[1], [0], [0], [1], [0, 0, 1, 1], [], []>} : vector<2x128xf32>, vector<128x256xf32>, vector<2x256xf32> -> vector<2x256xf32>
    %c0_6 = arith.constant 0 : index
    %c0_7 = arith.constant 0 : index
    %5 = vector.load %arg4[%c0_6, %c0_7] : memref<1x256xf32, #tpu.memory_space<vmem>>, vector<1x256xf32>
    %6 = vector.broadcast %5 : vector<1x256xf32> to vector<2x256xf32>
    %7 = arith.addf %4, %6 : vector<2x256xf32>
    %cst_8 = arith.constant 3.000000e+00 : f32
    %8 = vector.broadcast %cst_8 : f32 to vector<2x256xf32>
    %9 = arith.addf %7, %8 : vector<2x256xf32>
    %cst_9 = arith.constant 0.000000e+00 : f32
    %cst_10 = arith.constant 6.000000e+00 : f32
    %10 = vector.broadcast %cst_9 : f32 to vector<2x256xf32>
    %11 = arith.maximumf %10, %9 : vector<2x256xf32>
    %12 = vector.broadcast %cst_10 : f32 to vector<2x256xf32>
    %13 = arith.minimumf %12, %11 : vector<2x256xf32>
    %14 = arith.mulf %7, %13 : vector<2x256xf32>
    %cst_11 = arith.constant 0.166666672 : f32
    %15 = vector.broadcast %cst_11 : f32 to vector<2x256xf32>
    %16 = arith.mulf %14, %15 : vector<2x256xf32>
    %c0_12 = arith.constant 0 : index
    %c0_13 = arith.constant 0 : index
    %17 = vector.load %arg5[%c0_12, %c0_13] : memref<256x32xf32, #tpu.memory_space<vmem>>, vector<256x32xf32>
    %cst_14 = arith.constant dense<0.000000e+00> : vector<2x32xf32>
    %18 = tpu.matmul %16, %17, %cst_14 {dimension_numbers = #tpu.dot_dimension_numbers<[1], [0], [0], [1], [0, 0, 1, 1], [], []>} : vector<2x256xf32>, vector<256x32xf32>, vector<2x32xf32> -> vector<2x32xf32>
    %c0_15 = arith.constant 0 : index
    %c0_16 = arith.constant 0 : index
    %19 = vector.load %arg6[%c0_15, %c0_16] : memref<1x32xf32, #tpu.memory_space<vmem>>, vector<1x32xf32>
    %20 = vector.broadcast %19 : vector<1x32xf32> to vector<2x32xf32>
    %21 = arith.addf %18, %20 : vector<2x32xf32>
    %22 = arith.negf %21 : vector<2x32xf32>
    %23 = math.exp %22 : vector<2x32xf32>
    %cst_17 = arith.constant 1.000000e+00 : f32
    %24 = vector.broadcast %cst_17 : f32 to vector<2x32xf32>
    %25 = arith.addf %24, %23 : vector<2x32xf32>
    %26 = arith.divf %24, %25 : vector<2x32xf32>
    %c0_18 = arith.constant 0 : index
    %c0_19 = arith.constant 0 : index
    %27 = vector.load %arg7[%c0_18, %c0_19] : memref<32x256xf32, #tpu.memory_space<vmem>>, vector<32x256xf32>
    %cst_20 = arith.constant dense<0.000000e+00> : vector<2x256xf32>
    %28 = tpu.matmul %26, %27, %cst_20 {dimension_numbers = #tpu.dot_dimension_numbers<[1], [0], [0], [1], [0, 0, 1, 1], [], []>} : vector<2x32xf32>, vector<32x256xf32>, vector<2x256xf32> -> vector<2x256xf32>
    %c0_21 = arith.constant 0 : index
    %c0_22 = arith.constant 0 : index
    %29 = vector.load %arg8[%c0_21, %c0_22] : memref<32x256xf32, #tpu.memory_space<vmem>>, vector<32x256xf32>
    %cst_23 = arith.constant dense<0.000000e+00> : vector<2x256xf32>
    %30 = tpu.matmul %26, %29, %cst_23 {dimension_numbers = #tpu.dot_dimension_numbers<[1], [0], [0], [1], [0, 0, 1, 1], [], []>} : vector<2x32xf32>, vector<32x256xf32>, vector<2x256xf32> -> vector<2x256xf32>
    %31 = arith.mulf %28, %30 : vector<2x256xf32>
    %c0_24 = arith.constant 0 : index
    %c0_25 = arith.constant 0 : index
    %32 = vector.load %arg1[%c0_24, %c0_25] : memref<2x1024xf32, #tpu.memory_space<vmem>>, vector<2x256xf32>
    %33 = arith.mulf %32, %31 : vector<2x256xf32>
    %c0_26 = arith.constant 0 : index
    %c0_27 = arith.constant 0 : index
    %34 = vector.load %arg9[%c0_26, %c0_27] : memref<2x1024xf32, #tpu.memory_space<vmem>>, vector<2x256xf32>
    tpu.vector_store %arg9[%c0_26, %c0_27], %33 {strides = array<i32>} : memref<2x1024xf32, #tpu.memory_space<vmem>>, vector<2x256xf32>,
    %c0_28 = arith.constant 0 : index
    %c256 = arith.constant 256 : index
    %35 = vector.load %arg1[%c0_28, %c256] : memref<2x1024xf32, #tpu.memory_space<vmem>>, vector<2x256xf32>
    %36 = arith.mulf %35, %31 : vector<2x256xf32>
    %c0_29 = arith.constant 0 : index
    %c256_30 = arith.constant 256 : index
    %37 = vector.load %arg9[%c0_29, %c256_30] : memref<2x1024xf32, #tpu.memory_space<vmem>>, vector<2x256xf32>
    tpu.vector_store %arg9[%c0_29, %c256_30], %36 {strides = array<i32>} : memref<2x1024xf32, #tpu.memory_space<vmem>>, vector<2x256xf32>,
    %c0_31 = arith.constant 0 : index
    %c512 = arith.constant 512 : index
    %38 = vector.load %arg1[%c0_31, %c512] : memref<2x1024xf32, #tpu.memory_space<vmem>>, vector<2x256xf32>
    %39 = arith.mulf %38, %31 : vector<2x256xf32>
    %c0_32 = arith.constant 0 : index
    %c512_33 = arith.constant 512 : index
    %40 = vector.load %arg9[%c0_32, %c512_33] : memref<2x1024xf32, #tpu.memory_space<vmem>>, vector<2x256xf32>
    tpu.vector_store %arg9[%c0_32, %c512_33], %39 {strides = array<i32>} : memref<2x1024xf32, #tpu.memory_space<vmem>>, vector<2x256xf32>,
    %c0_34 = arith.constant 0 : index
    %c768 = arith.constant 768 : index
    %41 = vector.load %arg1[%c0_34, %c768] : memref<2x1024xf32, #tpu.memory_space<vmem>>, vector<2x256xf32>
    %42 = arith.mulf %41, %31 : vector<2x256xf32>
    %c0_35 = arith.constant 0 : index
    %c768_36 = arith.constant 768 : index
    %43 = vector.load %arg9[%c0_35, %c768_36] : memref<2x1024xf32, #tpu.memory_space<vmem>>, vector<2x256xf32>
    tpu.vector_store %arg9[%c0_35, %c768_36], %42 {strides = array<i32>} : memref<2x1024xf32, #tpu.memory_space<vmem>>, vector<2x256xf32>,
    return
  }
  func.func @transform_0(%arg0: i32) -> (i32, i32) {
    %c0_i32 = arith.constant 0 : i32
    %c0_i32_0 = arith.constant 0 : i32
    return %arg0, %c0_i32 : i32, i32
  }
  func.func @transform_1(%arg0: i32) -> (i32, i32) {
    %c0_i32 = arith.constant 0 : i32
    %c0_i32_0 = arith.constant 0 : i32
    %c0_i32_1 = arith.constant 0 : i32
    return %c0_i32, %c0_i32_0 : i32, i32
  }
  func.func @transform_2(%arg0: i32) -> (i32, i32) {
    %c0_i32 = arith.constant 0 : i32
    %c0_i32_0 = arith.constant 0 : i32
    %c0_i32_1 = arith.constant 0 : i32
    return %c0_i32, %c0_i32_0 : i32, i32
  }
  func.func @transform_3(%arg0: i32) -> (i32, i32) {
    %c0_i32 = arith.constant 0 : i32
    %c0_i32_0 = arith.constant 0 : i32
    %c0_i32_1 = arith.constant 0 : i32
    return %c0_i32, %c0_i32_0 : i32, i32
  }
  func.func @transform_4(%arg0: i32) -> (i32, i32) {
    %c0_i32 = arith.constant 0 : i32
    %c0_i32_0 = arith.constant 0 : i32
    %c0_i32_1 = arith.constant 0 : i32
    return %c0_i32, %c0_i32_0 : i32, i32
  }
  func.func @transform_5(%arg0: i32) -> (i32, i32) {
    %c0_i32 = arith.constant 0 : i32
    %c0_i32_0 = arith.constant 0 : i32
    %c0_i32_1 = arith.constant 0 : i32
    return %c0_i32, %c0_i32_0 : i32, i32
  }
  func.func @transform_6(%arg0: i32) -> (i32, i32) {
    %c0_i32 = arith.constant 0 : i32
    %c0_i32_0 = arith.constant 0 : i32
    %c0_i32_1 = arith.constant 0 : i32
    return %c0_i32, %c0_i32_0 : i32, i32
  }
  func.func @transform_7(%arg0: i32) -> (i32, i32) {
    %c0_i32 = arith.constant 0 : i32
    %c0_i32_0 = arith.constant 0 : i32
    %c0_i32_1 = arith.constant 0 : i32
    return %c0_i32, %c0_i32_0 : i32, i32
  }
  func.func @transform_8(%arg0: i32) -> (i32, i32) {
    %c0_i32 = arith.constant 0 : i32
    %c0_i32_0 = arith.constant 0 : i32
    return %arg0, %c0_i32 : i32, i32
  }
}

</mosaic_0001>

<bundles_post_ra>
// kernel: tpu_custom_call.1
= control target key start
LH: loop header
LB: loop body
LE: loop exit
PB: predicated region body
PF: predicated region fallthrough
CT: control target
= control target key end

     0   :  { %13 = vsyncpa [#allocation3], 0  ;;  %s1157_s0 = inlined_call_operand.hbm [shape: f32[2,1024], index: 0, kind: input, shape index: {}]   ;;  %s1158_s1 = inlined_call_operand.hbm [shape: f32[1024,128], index: 1, kind: input, shape index: {}]   ;;  %s1159_s2 = inlined_call_operand.vmem [shape: f32[128,256], index: 2, kind: input, shape index: {}]   ;;  %s1160_s3 = inlined_call_operand.hbm [shape: f32[1,256], index: 3, kind: input, shape index: {}]   ;;  %s1161_s4 = inlined_call_operand.vmem [shape: f32[256,32], index: 4, kind: input, shape index: {}]   ;;  %s1162_s5 = inlined_call_operand.vmem [shape: f32[1,32], index: 5, kind: input, shape index: {}]   ;;  %s1163_s6 = inlined_call_operand.vmem [shape: f32[32,256], index: 6, kind: input, shape index: {}]   ;;  %s1164_s7 = inlined_call_operand.hbm [shape: f32[32,256], index: 7, kind: input, shape index: {}]   ;;  %s1165_s8 = inlined_call_operand.hbm [shape: f32[2,1024], index: 8, kind: output, shape index: {}]  }
   0x1   :  { %14 = vsyncpa [#allocation6], 0 }
   0x2   :  { %15 = vsyncpa [#allocation9], 0  ;;  %s32_s29 = sshll.u32 %s1158_s1, 4  ;;  %s33_s29 = int_to_ptr.hbm [resolvable:$true] %s32_s29 }
   0x3   :  { %16 = vsyncpa [#allocation4], 0  ;;  %s869_s30 = smov [#allocation5]   ;;  %s22_s12 = sshll.u32 %s1157_s0, 4  ;;  %s23_s12 = int_to_ptr.hbm [resolvable:$true] %s22_s12 }
   0x4   :  { %s34_s9 = sshll.u32 %s869_s30, 4  ;;  %s870_s13 = smov 128   ;;  %s35_s9 = int_to_ptr.vmem [resolvable:$true] %s34_s9 }
   0x5   :  { %s871_s14 = smov 8   ;;  %s872_s15 = smov [#allocation2]  }
   0x6   :  { %40 = dma.hbm_to_vmem [thread:$0]  %s33_s29, 16384, %s35_s9, [#allocation6], %s870_s13, %s870_s13, %s871_s14  }
   0x7   :  { %s24_s16 = sshll.u32 %s872_s15, 4  ;;  %s48_s19 = sshll.u32 %s1160_s3, 4  ;;  %s25_s16 = int_to_ptr.vmem [resolvable:$true] %s24_s16  ;;  %s49_s19 = int_to_ptr.hbm [resolvable:$true] %s48_s19 }
   0x8   :  { %27 = dma.hbm_to_vmem [thread:$0]  %s23_s12, 256, %s25_s16, [#allocation3]  }
   0x9   :  { %s64_s21 = sshll.u32 %s1164_s7, 4  ;;  %s873_s22 = smov [#allocation7]   ;;  %s65_s21 = int_to_ptr.hbm [resolvable:$true] %s64_s21 }
   0xa   :  { %s50_s23 = sshll.u32 %s873_s22, 4  ;;  %s874_s0 = smov [#allocation8]   ;;  %s51_s23 = int_to_ptr.vmem [resolvable:$true] %s50_s23 }
   0xb   :  { %53 = dma.hbm_to_vmem [thread:$0]  %s49_s19, 32, %s51_s23, [#allocation6]  }
   0xc   :  { %s66_s24 = sshll.u32 %s874_s0, 4  ;;  %s875_s25 = smov 256   ;;  %s67_s24 = int_to_ptr.vmem [resolvable:$true] %s66_s24 }
   0xd   :  { %s876_s26 = smov 16  }
   0xe   :  { %72 = dma.hbm_to_vmem [thread:$0]  %s65_s21, 1024, %s67_s24, [#allocation9], %s875_s25, %s875_s25, %s876_s26  }
   0xf   :  { %861 = dma.done.wait [#allocation3], 256  }
  0x10   :  { %862 = vsyncadd [#allocation3], 4294967040 }
  0x11   :  { %863 = dma.done.wait [#allocation6], 16416  }
  0x12   :  { %864 = vsyncadd [#allocation6], 4294950880 }
  0x13   :  { %865 = dma.done.wait [#allocation9], 1024  }
  0x14   :  { %866 = vsyncadd [#allocation9], 4294966272  ;;  %v106_v0 = vld [vmem:[#allocation5 + $0x78] sm:$0xff]  ;;  %v105_v2 = vld [vmem:[#allocation5 + $0x70] sm:$0xff]  ;;  %vm591_vm3 = vcmask 261120   ;;  %vm689_vm5 = vcmask 1041408  }
  0x15   :  { %v138_v1 = vld [vmem:[#allocation5 + $0x178] sm:$0xff]  ;;  %240 = vmatpush.msra.mxu0 %v106_v0  ;;  %v137_v4 = vld [vmem:[#allocation5 + $0x170] sm:$0xff]  ;;  %v104_v6 = vld [vmem:[#allocation5 + $0x68] sm:$0xff]  ;;  %s710_s17 = sshll.u32 %s1165_s8, 4  ;;  %s711_s17 = int_to_ptr.hbm [resolvable:$true] %s710_s17 }
  0x16   :  { %280 = vmatpush.msra.mxu2 %v138_v1  ;;  %v122_v3 = vld [vmem:[#allocation5 + $0xf8] sm:$0xff]  ;;  %v121_v7 = vld [vmem:[#allocation5 + $0xf0] sm:$0xff]  ;;  %v136_v8 = vld [vmem:[#allocation5 + $0x168] sm:$0xff] }
  0x17   :  { %v154_v5 = vld [vmem:[#allocation5 + $0x1f8] sm:$0xff]  ;;  %260 = vmatpush.msra.mxu1 %v122_v3  ;;  %241 = vmatpush.msra.mxu0 %v105_v2  ;;  %v153_v9 = vld [vmem:[#allocation5 + $0x1f0] sm:$0xff]  ;;  %v120_v10 = vld [vmem:[#allocation5 + $0xe8] sm:$0xff] }
  0x18   :  { %300 = vmatpush.msra.mxu3 %v154_v5  ;;  %281 = vmatpush.msra.mxu2 %v137_v4  ;;  %v103_v11 = vld [vmem:[#allocation5 + $0x60] sm:$0xff]  ;;  %v152_v13 = vld [vmem:[#allocation5 + $0x1e8] sm:$0xff]  ;;  %v102_v16 = vld [vmem:[#allocation5 + $0x58] sm:$0xff] }
  0x19   :  { %261 = vmatpush.msra.mxu1 %v121_v7  ;;  %v135_v12 = vld [vmem:[#allocation5 + $0x160] sm:$0xff]  ;;  %242 = vmatpush.msra.mxu0 %v104_v6  ;;  %v134_v17 = vld [vmem:[#allocation5 + $0x158] sm:$0xff]  ;;  %v101_v20 = vld [vmem:[#allocation5 + $0x50] sm:$0xff] }
  0x1a   :  { %301 = vmatpush.msra.mxu3 %v153_v9  ;;  %282 = vmatpush.msra.mxu2 %v136_v8  ;;  %v119_v14 = vld [vmem:[#allocation5 + $0xe0] sm:$0xff]  ;;  %v118_v18 = vld [vmem:[#allocation5 + $0xd8] sm:$0xff]  ;;  %v133_v21 = vld [vmem:[#allocation5 + $0x150] sm:$0xff] }
  0x1b   :  { %v151_v15 = vld [vmem:[#allocation5 + $0x1e0] sm:$0xff]  ;;  %262 = vmatpush.msra.mxu1 %v120_v10  ;;  %243 = vmatpush.msra.mxu0 %v103_v11  ;;  %v150_v19 = vld [vmem:[#allocation5 + $0x1d8] sm:$0xff]  ;;  %v117_v22 = vld [vmem:[#allocation5 + $0xd0] sm:$0xff] }
  0x1c   :  { %302 = vmatpush.msra.mxu3 %v152_v13  ;;  %283 = vmatpush.msra.mxu2 %v135_v12  ;;  %v149_v23 = vld [vmem:[#allocation5 + $0x1d0] sm:$0xff]  ;;  %v100_v24 = vld [vmem:[#allocation5 + $0x48] sm:$0xff]  ;;  %v99_v28 = vld [vmem:[#allocation5 + $0x40] sm:$0xff] }
  0x1d   :  { %263 = vmatpush.msra.mxu1 %v119_v14  ;;  %244 = vmatpush.msra.mxu0 %v102_v16  ;;  %v132_v25 = vld [vmem:[#allocation5 + $0x148] sm:$0xff]  ;;  %v131_v29 = vld [vmem:[#allocation5 + $0x140] sm:$0xff]  ;;  %v98_v32 = vld [vmem:[#allocation5 + $0x38] sm:$0xff] }
  0x1e   :  { %303 = vmatpush.msra.mxu3 %v151_v15  ;;  %284 = vmatpush.msra.mxu2 %v134_v17  ;;  %v116_v26 = vld [vmem:[#allocation5 + $0xc8] sm:$0xff]  ;;  %v115_v30 = vld [vmem:[#allocation5 + $0xc0] sm:$0xff]  ;;  %v130_v33 = vld [vmem:[#allocation5 + $0x138] sm:$0xff] }
  0x1f   :  { %264 = vmatpush.msra.mxu1 %v118_v18  ;;  %245 = vmatpush.msra.mxu0 %v101_v20  ;;  %v148_v27 = vld [vmem:[#allocation5 + $0x1c8] sm:$0xff]  ;;  %v147_v31 = vld [vmem:[#allocation5 + $0x1c0] sm:$0xff]  ;;  %v114_v34 = vld [vmem:[#allocation5 + $0xb8] sm:$0xff] }
  0x20   :  { %304 = vmatpush.msra.mxu3 %v150_v19  ;;  %285 = vmatpush.msra.mxu2 %v133_v21  ;;  %v146_v35 = vld [vmem:[#allocation5 + $0x1b8] sm:$0xff]  ;;  %v97_v36 = vld [vmem:[#allocation5 + $0x30] sm:$0xff]  ;;  %v96_v40 = vld [vmem:[#allocation5 + $0x28] sm:$0xff] }
  0x21   :  { %265 = vmatpush.msra.mxu1 %v117_v22  ;;  %246 = vmatpush.msra.mxu0 %v100_v24  ;;  %v129_v37 = vld [vmem:[#allocation5 + $0x130] sm:$0xff]  ;;  %v128_v41 = vld [vmem:[#allocation5 + $0x128] sm:$0xff]  ;;  %v95_v44 = vld [vmem:[#allocation5 + $0x20] sm:$0xff] }
  0x22   :  { %305 = vmatpush.msra.mxu3 %v149_v23  ;;  %286 = vmatpush.msra.mxu2 %v132_v25  ;;  %v113_v38 = vld [vmem:[#allocation5 + $0xb0] sm:$0xff]  ;;  %v112_v42 = vld [vmem:[#allocation5 + $0xa8] sm:$0xff]  ;;  %v127_v45 = vld [vmem:[#allocation5 + $0x120] sm:$0xff] }
  0x23   :  { %266 = vmatpush.msra.mxu1 %v116_v26  ;;  %247 = vmatpush.msra.mxu0 %v99_v28  ;;  %v145_v39 = vld [vmem:[#allocation5 + $0x1b0] sm:$0xff]  ;;  %v144_v43 = vld [vmem:[#allocation5 + $0x1a8] sm:$0xff]  ;;  %v111_v46 = vld [vmem:[#allocation5 + $0xa0] sm:$0xff] }
  0x24   :  { %306 = vmatpush.msra.mxu3 %v148_v27  ;;  %287 = vmatpush.msra.mxu2 %v131_v29  ;;  %v143_v47 = vld [vmem:[#allocation5 + $0x1a0] sm:$0xff]  ;;  %v94_v48 = vld [vmem:[#allocation5 + $0x18] sm:$0xff]  ;;  %v93_v52 = vld [vmem:[#allocation5 + $0x10] sm:$0xff] }
  0x25   :  { %267 = vmatpush.msra.mxu1 %v115_v30  ;;  %248 = vmatpush.msra.mxu0 %v98_v32  ;;  %v126_v49 = vld [vmem:[#allocation5 + $0x118] sm:$0xff]  ;;  %v125_v53 = vld [vmem:[#allocation5 + $0x110] sm:$0xff]  ;;  %v92_v56 = vld [vmem:[#allocation5 + $0x8] sm:$0xff] }
  0x26   :  { %307 = vmatpush.msra.mxu3 %v147_v31  ;;  %288 = vmatpush.msra.mxu2 %v130_v33  ;;  %v110_v50 = vld [vmem:[#allocation5 + $0x98] sm:$0xff]  ;;  %v109_v54 = vld [vmem:[#allocation5 + $0x90] sm:$0xff]  ;;  %v124_v57 = vld [vmem:[#allocation5 + $0x108] sm:$0xff] }
  0x27   :  { %268 = vmatpush.msra.mxu1 %v114_v34  ;;  %249 = vmatpush.msra.mxu0 %v97_v36  ;;  %v142_v51 = vld [vmem:[#allocation5 + $0x198] sm:$0xff]  ;;  %v141_v55 = vld [vmem:[#allocation5 + $0x190] sm:$0xff]  ;;  %v108_v58 = vld [vmem:[#allocation5 + $0x88] sm:$0xff] }
  0x28   :  { %308 = vmatpush.msra.mxu3 %v146_v35  ;;  %289 = vmatpush.msra.mxu2 %v129_v37  ;;  %v140_v59 = vld [vmem:[#allocation5 + $0x188] sm:$0xff]  ;;  %v91_v60 = vld [vmem:[#allocation5] sm:$0xff]  ;;  %v170_v62 = vld [vmem:[#allocation5 + $0x278] sm:$0xff] }
  0x29   :  { %269 = vmatpush.msra.mxu1 %v113_v38  ;;  %250 = vmatpush.msra.mxu0 %v96_v40  ;;  %v123_v61 = vld [vmem:[#allocation5 + $0x100] sm:$0xff]  ;;  %v202_v63 = vld [vmem:[#allocation5 + $0x378] sm:$0xff]  ;;  %v169_v2 = vld [vmem:[#allocation5 + $0x270] sm:$0xff] }
  0x2a   :  { %309 = vmatpush.msra.mxu3 %v145_v39  ;;  %290 = vmatpush.msra.mxu2 %v128_v41  ;;  %v107_v0 = vld [vmem:[#allocation5 + $0x80] sm:$0xff]  ;;  %v186_v3 = vld [vmem:[#allocation5 + $0x2f8] sm:$0xff]  ;;  %v201_v4 = vld [vmem:[#allocation5 + $0x370] sm:$0xff] }
  0x2b   :  { %270 = vmatpush.msra.mxu1 %v112_v42  ;;  %251 = vmatpush.msra.mxu0 %v95_v44  ;;  %v139_v1 = vld [vmem:[#allocation5 + $0x180] sm:$0xff]  ;;  %v218_v5 = vld [vmem:[#allocation5 + $0x3f8] sm:$0xff]  ;;  %v168_v6 = vld [vmem:[#allocation5 + $0x268] sm:$0xff] }
  0x2c   :  { %310 = vmatpush.msra.mxu3 %v144_v43  ;;  %291 = vmatpush.msra.mxu2 %v127_v45  ;;  %v185_v7 = vld [vmem:[#allocation5 + $0x2f0] sm:$0xff]  ;;  %v200_v8 = vld [vmem:[#allocation5 + $0x368] sm:$0xff]  ;;  %v167_v10 = vld [vmem:[#allocation5 + $0x260] sm:$0xff] }
  0x2d   :  { %271 = vmatpush.msra.mxu1 %v111_v46  ;;  %252 = vmatpush.msra.mxu0 %v94_v48  ;;  %v217_v9 = vld [vmem:[#allocation5 + $0x3f0] sm:$0xff]  ;;  %v184_v11 = vld [vmem:[#allocation5 + $0x2e8] sm:$0xff]  ;;  %v199_v13 = vld [vmem:[#allocation5 + $0x360] sm:$0xff] }
  0x2e   :  { %311 = vmatpush.msra.mxu3 %v143_v47  ;;  %292 = vmatpush.msra.mxu2 %v126_v49  ;;  %v89_v12 = vld [vmem:[#allocation2] sm:$0xff]  ;;  %v216_v14 = vld [vmem:[#allocation5 + $0x3e8] sm:$0xff]  ;;  %v166_v15 = vld [vmem:[#allocation5 + $0x258] sm:$0xff] }
  0x2f   :  { %272 = vmatpush.msra.mxu1 %v110_v50  ;;  %253 = vmatpush.msra.mxu0 %v93_v52  ;;  %221 = vst [vmem:[#allocation1] ss:$4 sm:$0xff] %v89_v12  ;;  %v183_v16 = vld [vmem:[#allocation5 + $0x2e0] sm:$0xff]  ;;  %v198_v17 = vld [vmem:[#allocation5 + $0x358] sm:$0xff]  ;;  %v165_v19 = vld [vmem:[#allocation5 + $0x250] sm:$0xff] }
  0x30   :  { %312 = vmatpush.msra.mxu3 %v142_v51  ;;  %293 = vmatpush.msra.mxu2 %v125_v53  ;;  %v215_v18 = vld [vmem:[#allocation5 + $0x3e0] sm:$0xff]  ;;  %v182_v20 = vld [vmem:[#allocation5 + $0x2d8] sm:$0xff]  ;;  %v197_v21 = vld [vmem:[#allocation5 + $0x350] sm:$0xff] }
  0x31   :  { %273 = vmatpush.msra.mxu1 %v109_v54  ;;  %254 = vmatpush.msra.mxu0 %v92_v56  ;;  %v214_v22 = vld [vmem:[#allocation5 + $0x3d8] sm:$0xff]  ;;  %v164_v23 = vld [vmem:[#allocation5 + $0x248] sm:$0xff]  ;;  %v181_v24 = vld [vmem:[#allocation5 + $0x2d0] sm:$0xff] }
  0x32   :  { %313 = vmatpush.msra.mxu3 %v141_v55  ;;  %294 = vmatpush.msra.mxu2 %v124_v57  ;;  %v196_v25 = vld [vmem:[#allocation5 + $0x348] sm:$0xff]  ;;  %v213_v26 = vld [vmem:[#allocation5 + $0x3d0] sm:$0xff]  ;;  %v90_v27 = vld [vmem:[#allocation2 + $0x8] sm:$0xff] }
  0x33   :  { %274 = vmatpush.msra.mxu1 %v108_v58  ;;  %255 = vmatpush.msra.mxu0 %v91_v60  ;;  %v163_v28 = vld [vmem:[#allocation5 + $0x240] sm:$0xff]  ;;  %v180_v29 = vld [vmem:[#allocation5 + $0x2c8] sm:$0xff]  ;;  %v162_v32 = vld [vmem:[#allocation5 + $0x238] sm:$0xff]  ;;  %223 = vst [vmem:[#allocation1 + $0x20] ss:$4 sm:$0xff] %v90_v27 }
  0x34   :  { %314 = vmatpush.msra.mxu3 %v140_v59  ;;  %295 = vmatpush.msra.mxu2 %v123_v61  ;;  %v195_v30 = vld [vmem:[#allocation5 + $0x340] sm:$0xff]  ;;  %v212_v31 = vld [vmem:[#allocation5 + $0x3c8] sm:$0xff]  ;;  %v194_v34 = vld [vmem:[#allocation5 + $0x338] sm:$0xff] }
  0x35   :  { %320 = vmatpush.msrb.mxu0 %v170_v62  ;;  %275 = vmatpush.msra.mxu1 %v107_v0  ;;  %v179_v33 = vld [vmem:[#allocation5 + $0x2c0] sm:$0xff]  ;;  %v161_v36 = vld [vmem:[#allocation5 + $0x230] sm:$0xff]  ;;  %v178_v37 = vld [vmem:[#allocation5 + $0x2b8] sm:$0xff] }
  0x36   :  { %360 = vmatpush.msrb.mxu2 %v202_v63  ;;  %315 = vmatpush.msra.mxu3 %v139_v1  ;;  %v211_v35 = vld [vmem:[#allocation5 + $0x3c0] sm:$0xff]  ;;  %v193_v38 = vld [vmem:[#allocation5 + $0x330] sm:$0xff]  ;;  %v210_v39 = vld [vmem:[#allocation5 + $0x3b8] sm:$0xff] }
  0x37   :  { %321 = vmatpush.msrb.mxu0 %v169_v2  ;;  %340 = vmatpush.msrb.mxu1 %v186_v3  ;;  %v160_v40 = vld [vmem:[#allocation5 + $0x228] sm:$0xff]  ;;  %v177_v41 = vld [vmem:[#allocation5 + $0x2b0] sm:$0xff]  ;;  %v226_v44 = vld.sshfl [vmem:[#allocation1 + $0x10] sm:$0xff pattern:$0x73625140] }
  0x38   :  { %361 = vmatpush.msrb.mxu2 %v201_v4  ;;  %380 = vmatpush.msrb.mxu3 %v218_v5  ;;  %v192_v42 = vld [vmem:[#allocation5 + $0x328] sm:$0xff]  ;;  %v209_v43 = vld [vmem:[#allocation5 + $0x3b0] sm:$0xff]  ;;  %v159_v45 = vld [vmem:[#allocation5 + $0x220] sm:$0xff] }
  0x39   :  { %322 = vmatpush.msrb.mxu0 %v168_v6  ;;  %341 = vmatpush.msrb.mxu1 %v185_v7  ;;  %v176_v46 = vld [vmem:[#allocation5 + $0x2a8] sm:$0xff]  ;;  %v191_v47 = vld [vmem:[#allocation5 + $0x320] sm:$0xff]  ;;  %v158_v51 = vld [vmem:[#allocation5 + $0x218] sm:$0xff] }
  0x3a   :  { %362 = vmatpush.msrb.mxu2 %v200_v8  ;;  %381 = vmatpush.msrb.mxu3 %v217_v9  ;;  %v208_v48 = vld [vmem:[#allocation5 + $0x3a8] sm:$0xff]  ;;  %v227_v50 = vld.sshfl [vmem:[#allocation1 + $0x18] sm:$0xff pattern:$0x73625140]  ;;  %v190_v53 = vld [vmem:[#allocation5 + $0x318] sm:$0xff] }
  0x3b   :  { %323 = vmatpush.msrb.mxu0 %v167_v10  ;;  %342 = vmatpush.msrb.mxu1 %v184_v11  ;;  %v224_v49 = vld.sshfl [vmem:[#allocation1] sm:$0xff pattern:$0x73625140]  ;;  %v175_v52 = vld [vmem:[#allocation5 + $0x2a0] sm:$0xff]  ;;  %v157_v56 = vld [vmem:[#allocation5 + $0x210] sm:$0xff] }
  0x3c   :  { %363 = vmatpush.msrb.mxu2 %v199_v13  ;;  %382 = vmatpush.msrb.mxu3 %v216_v14  ;;  %v207_v54 = vld [vmem:[#allocation5 + $0x3a0] sm:$0xff]  ;;  %v225_v55 = vld.sshfl [vmem:[#allocation1 + $0x8] sm:$0xff pattern:$0x73625140]  ;;  %v174_v57 = vld [vmem:[#allocation5 + $0x298] sm:$0xff] }
  0x3d   :  { %324 = vmatpush.msrb.mxu0 %v166_v15  ;;  %343 = vmatpush.msrb.mxu1 %v183_v16  ;;  %v189_v58 = vld [vmem:[#allocation5 + $0x310] sm:$0xff]  ;;  %v206_v59 = vld [vmem:[#allocation5 + $0x398] sm:$0xff]  ;;  %v156_v60 = vld [vmem:[#allocation5 + $0x208] sm:$0xff] }
  0x3e   :  { %364 = vmatpush.msrb.mxu2 %v198_v17  ;;  %383 = vmatpush.msrb.mxu3 %v215_v18  ;;  %v173_v61 = vld [vmem:[#allocation5 + $0x290] sm:$0xff]  ;;  %v188_v62 = vld [vmem:[#allocation5 + $0x308] sm:$0xff]  ;;  %v155_v0 = vld [vmem:[#allocation5 + $0x200] sm:$0xff] }
  0x3f   :  { %325 = vmatpush.msrb.mxu0 %v165_v19  ;;  %344 = vmatpush.msrb.mxu1 %v182_v20  ;;  %v205_v63 = vld [vmem:[#allocation5 + $0x390] sm:$0xff]  ;;  %v172_v1 = vld [vmem:[#allocation5 + $0x288] sm:$0xff]  ;;  %v187_v2 = vld [vmem:[#allocation5 + $0x300] sm:$0xff] }
  0x40   :  { %365 = vmatpush.msrb.mxu2 %v197_v21  ;;  %384 = vmatpush.msrb.mxu3 %v214_v22  ;;  %v204_v3 = vld [vmem:[#allocation5 + $0x388] sm:$0xff]  ;;  %v230_v5 = vld.sshfl [vmem:[#allocation1 + $0x30] sm:$0xff pattern:$0x73625140]  ;;  %v171_v6 = vld [vmem:[#allocation5 + $0x280] sm:$0xff] }
  0x41   :  { %326 = vmatpush.msrb.mxu0 %v164_v23  ;;  %345 = vmatpush.msrb.mxu1 %v181_v24  ;;  %v228_v4 = vld.sshfl [vmem:[#allocation1 + $0x20] sm:$0xff pattern:$0x73625140]  ;;  %v203_v7 = vld [vmem:[#allocation5 + $0x380] sm:$0xff]  ;;  %v430_v10 = vld [vmem:[%s1159_s2 + $0xf0] sm:$0xff] }
  0x42   :  { %366 = vmatpush.msrb.mxu2 %v196_v25  ;;  %385 = vmatpush.msrb.mxu3 %v213_v26  ;;  %v229_v8 = vld.sshfl [vmem:[#allocation1 + $0x28] sm:$0xff pattern:$0x73625140]  ;;  %v231_v9 = vld.sshfl [vmem:[#allocation1 + $0x38] sm:$0xff pattern:$0x73625140] }
  0x43   :  { %327 = vmatpush.msrb.mxu0 %v163_v28  ;;  %346 = vmatpush.msrb.mxu1 %v180_v29  ;;  %v431_v11 = vld [vmem:[%s1159_s2 + $0xf8] sm:$0xff]  ;;  %v428_v12 = vld [vmem:[%s1159_s2 + $0xe0] sm:$0xff]  ;;  %v429_v13 = vld [vmem:[%s1159_s2 + $0xe8] sm:$0xff] }
  0x44   :  { %367 = vmatpush.msrb.mxu2 %v195_v30  ;;  %386 = vmatpush.msrb.mxu3 %v212_v31  ;;  %v426_v14 = vld [vmem:[%s1159_s2 + $0xd0] sm:$0xff]  ;;  %v427_v15 = vld [vmem:[%s1159_s2 + $0xd8] sm:$0xff]  ;;  %v424_v16 = vld [vmem:[%s1159_s2 + $0xc0] sm:$0xff] }
  0x45   :  { %328 = vmatpush.msrb.mxu0 %v162_v32  ;;  %347 = vmatpush.msrb.mxu1 %v179_v33  ;;  %v425_v17 = vld [vmem:[%s1159_s2 + $0xc8] sm:$0xff]  ;;  %v422_v18 = vld [vmem:[%s1159_s2 + $0xb0] sm:$0xff]  ;;  %v423_v19 = vld [vmem:[%s1159_s2 + $0xb8] sm:$0xff] }
  0x46   :  { %368 = vmatpush.msrb.mxu2 %v194_v34  ;;  %387 = vmatpush.msrb.mxu3 %v211_v35  ;;  %v420_v20 = vld [vmem:[%s1159_s2 + $0xa0] sm:$0xff]  ;;  %v421_v21 = vld [vmem:[%s1159_s2 + $0xa8] sm:$0xff]  ;;  %v418_v22 = vld [vmem:[%s1159_s2 + $0x90] sm:$0xff] }
  0x47   :  { %329 = vmatpush.msrb.mxu0 %v161_v36  ;;  %348 = vmatpush.msrb.mxu1 %v178_v37  ;;  %v419_v23 = vld [vmem:[%s1159_s2 + $0x98] sm:$0xff]  ;;  %v416_v24 = vld [vmem:[%s1159_s2 + $0x80] sm:$0xff]  ;;  %v417_v25 = vld [vmem:[%s1159_s2 + $0x88] sm:$0xff] }
  0x48   :  { %369 = vmatpush.msrb.mxu2 %v193_v38  ;;  %388 = vmatpush.msrb.mxu3 %v210_v39  ;;  %v414_v26 = vld [vmem:[%s1159_s2 + $0x70] sm:$0xff]  ;;  %v415_v27 = vld [vmem:[%s1159_s2 + $0x78] sm:$0xff]  ;;  %v412_v28 = vld [vmem:[%s1159_s2 + $0x60] sm:$0xff] }
  0x49   :  { %330 = vmatpush.msrb.mxu0 %v160_v40  ;;  %349 = vmatpush.msrb.mxu1 %v177_v41  ;;  %v413_v29 = vld [vmem:[%s1159_s2 + $0x68] sm:$0xff]  ;;  %v410_v30 = vld [vmem:[%s1159_s2 + $0x50] sm:$0xff]  ;;  %v411_v31 = vld [vmem:[%s1159_s2 + $0x58] sm:$0xff] }
  0x4a   :  { %370 = vmatpush.msrb.mxu2 %v192_v42  ;;  %389 = vmatpush.msrb.mxu3 %v209_v43  ;;  %v408_v32 = vld [vmem:[%s1159_s2 + $0x40] sm:$0xff]  ;;  %v409_v33 = vld [vmem:[%s1159_s2 + $0x48] sm:$0xff]  ;;  %v406_v34 = vld [vmem:[%s1159_s2 + $0x30] sm:$0xff] }
  0x4b   :  { %296 = vmatmul.f32.vlgmr.msra.gmra.mxu2 %v226_v44  ;;  %331 = vmatpush.msrb.mxu0 %v159_v45  ;;  %v407_v35 = vld [vmem:[%s1159_s2 + $0x38] sm:$0xff]  ;;  %v404_v36 = vld [vmem:[%s1159_s2 + $0x20] sm:$0xff]  ;;  %v405_v37 = vld [vmem:[%s1159_s2 + $0x28] sm:$0xff] }
  0x4c   :  { %350 = vmatpush.msrb.mxu1 %v176_v46  ;;  %371 = vmatpush.msrb.mxu2 %v191_v47  ;;  %v402_v38 = vld [vmem:[%s1159_s2 + $0x10] sm:$0xff]  ;;  %v403_v39 = vld [vmem:[%s1159_s2 + $0x18] sm:$0xff]  ;;  %v400_v40 = vld [vmem:[%s1159_s2] sm:$0xff] }
  0x4d   :  { %390 = vmatpush.msrb.mxu3 %v208_v48  ;;  %256 = vmatmul.f32.vlgmr.msra.gmra.mxu0 %v224_v49  ;;  %v401_v41 = vld [vmem:[%s1159_s2 + $0x8] sm:$0xff]  ;;  %v503_v42 = vld [vmem:[%s1161_s4 + $0x78] sm:$0xff]  ;;  %v502_v44 = vld [vmem:[%s1161_s4 + $0x70] sm:$0xff] }
  0x4e   :  { %316 = vmatmul.f32.vlgmr.msra.gmra.mxu3 %v227_v50  ;;  %332 = vmatpush.msrb.mxu0 %v158_v51  ;;  %v519_v43 = vld [vmem:[%s1161_s4 + $0xf8] sm:$0xff]  ;;  %v518_v45 = vld [vmem:[%s1161_s4 + $0xf0] sm:$0xff]  ;;  %v501_v46 = vld [vmem:[%s1161_s4 + $0x68] sm:$0xff] }
  0x4f   :  { %351 = vmatpush.msrb.mxu1 %v175_v52  ;;  %372 = vmatpush.msrb.mxu2 %v190_v53  ;;  %v517_v47 = vld [vmem:[%s1161_s4 + $0xe8] sm:$0xff]  ;;  %v500_v48 = vld [vmem:[%s1161_s4 + $0x60] sm:$0xff]  ;;  %v499_v50 = vld [vmem:[%s1161_s4 + $0x58] sm:$0xff] }
  0x50   :  { %391 = vmatpush.msrb.mxu3 %v207_v54  ;;  %276 = vmatmul.f32.vlgmr.msra.gmra.mxu1 %v225_v55  ;;  %v516_v49 = vld [vmem:[%s1161_s4 + $0xe0] sm:$0xff]  ;;  %v515_v51 = vld [vmem:[%s1161_s4 + $0xd8] sm:$0xff]  ;;  %v498_v52 = vld [vmem:[%s1161_s4 + $0x50] sm:$0xff] }
  0x51   :  { %333 = vmatpush.msrb.mxu0 %v157_v56  ;;  %352 = vmatpush.msrb.mxu1 %v174_v57  ;;  %v514_v53 = vld [vmem:[%s1161_s4 + $0xd0] sm:$0xff]  ;;  %v497_v54 = vld [vmem:[%s1161_s4 + $0x48] sm:$0xff]  ;;  %v496_v57 = vld [vmem:[%s1161_s4 + $0x40] sm:$0xff] }
  0x52   :  { %373 = vmatpush.msrb.mxu2 %v189_v58  ;;  %392 = vmatpush.msrb.mxu3 %v206_v59  ;;  %v513_v55 = vld [vmem:[%s1161_s4 + $0xc8] sm:$0xff]  ;;  %v512_v58 = vld [vmem:[%s1161_s4 + $0xc0] sm:$0xff] }
  0x53   :  { %334 = vmatpush.msrb.mxu0 %v156_v60  ;;  %353 = vmatpush.msrb.mxu1 %v173_v61  ;;  %v495_v60 = vld [vmem:[%s1161_s4 + $0x38] sm:$0xff] }
  0x54   :  { %374 = vmatpush.msrb.mxu2 %v188_v62  ;;  %393 = vmatpush.msrb.mxu3 %v205_v63  ;;  %v511_v61 = vld [vmem:[%s1161_s4 + $0xb8] sm:$0xff] }
  0x55   :  { %335 = vmatpush.msrb.mxu0 %v155_v0  ;;  %354 = vmatpush.msrb.mxu1 %v172_v1 }
  0x56   :  { %375 = vmatpush.msrb.mxu2 %v187_v2  ;;  %394 = vmatpush.msrb.mxu3 %v204_v3 }
  0x57   :  { %336 = vmatmul.f32.vlgmr.msrb.gmra.mxu0 %v228_v4  ;;  %376 = vmatmul.f32.vlgmr.msrb.gmra.mxu2 %v230_v5 }
  0x58   :  { %355 = vmatpush.msrb.mxu1 %v171_v6  ;;  %395 = vmatpush.msrb.mxu3 %v203_v7 }
  0x59   :  { %356 = vmatmul.f32.vlgmr.msrb.gmra.mxu1 %v229_v8  ;;  %396 = vmatmul.f32.vlgmr.msrb.gmra.mxu3 %v231_v9 }
  0x5a   :  { %438 = vmatpush.msra.mxu0 %v430_v10  ;;  %458 = vmatpush.msra.mxu1 %v431_v11  ;;  %v494_v11 = vld [vmem:[%s1161_s4 + $0x30] sm:$0xff] }
  0x5b   :  { %524 = vmatpush.msra.mxu2 %v503_v42  ;;  %544 = vmatpush.msra.mxu3 %v519_v43  ;;  %v642_v42 = vld [vmem:[#allocation8 + $0x38] sm:$0xff] }
  0x5c   :  { %439 = vmatpush.msra.mxu0 %v428_v12  ;;  %459 = vmatpush.msra.mxu1 %v429_v13  ;;  %v510_v12 = vld [vmem:[%s1161_s4 + $0xb0] sm:$0xff]  ;;  %v493_v13 = vld [vmem:[%s1161_s4 + $0x28] sm:$0xff] }
  0x5d   :  { %525 = vmatpush.msra.mxu2 %v502_v44  ;;  %545 = vmatpush.msra.mxu3 %v518_v45  ;;  %v589_v43 = vld [vmem:[%s1163_s6 + $0x30] sm:$0xff]  ;;  %v590_v44 = vld [vmem:[%s1163_s6 + $0x38] sm:$0xff] }
  0x5e   :  { %440 = vmatpush.msra.mxu0 %v426_v14  ;;  %460 = vmatpush.msra.mxu1 %v427_v15  ;;  %v509_v14 = vld [vmem:[%s1161_s4 + $0xa8] sm:$0xff]  ;;  %v492_v15 = vld [vmem:[%s1161_s4 + $0x20] sm:$0xff] }
  0x5f   :  { %526 = vmatpush.msra.mxu2 %v501_v46  ;;  %546 = vmatpush.msra.mxu3 %v517_v47  ;;  %v641_v45 = vld [vmem:[#allocation8 + $0x30] sm:$0xff]  ;;  %v640_v46 = vld [vmem:[#allocation8 + $0x28] sm:$0xff] }
  0x60   :  { %441 = vmatpush.msra.mxu0 %v424_v16  ;;  %461 = vmatpush.msra.mxu1 %v425_v17  ;;  %v508_v16 = vld [vmem:[%s1161_s4 + $0xa0] sm:$0xff]  ;;  %v491_v17 = vld [vmem:[%s1161_s4 + $0x18] sm:$0xff] }
  0x61   :  { %527 = vmatpush.msra.mxu2 %v500_v48  ;;  %547 = vmatpush.msra.mxu3 %v516_v49  ;;  %v587_v47 = vld [vmem:[%s1163_s6 + $0x20] sm:$0xff]  ;;  %v588_v48 = vld [vmem:[%s1163_s6 + $0x28] sm:$0xff] }
  0x62   :  { %442 = vmatpush.msra.mxu0 %v422_v18  ;;  %462 = vmatpush.msra.mxu1 %v423_v19  ;;  %v507_v18 = vld [vmem:[%s1161_s4 + $0x98] sm:$0xff]  ;;  %v490_v19 = vld [vmem:[%s1161_s4 + $0x10] sm:$0xff] }
  0x63   :  { %528 = vmatpush.msra.mxu2 %v499_v50  ;;  %548 = vmatpush.msra.mxu3 %v515_v51  ;;  %v639_v49 = vld [vmem:[#allocation8 + $0x20] sm:$0xff]  ;;  %v638_v50 = vld [vmem:[#allocation8 + $0x18] sm:$0xff] }
  0x64   :  { %443 = vmatpush.msra.mxu0 %v420_v20  ;;  %463 = vmatpush.msra.mxu1 %v421_v21  ;;  %v506_v20 = vld [vmem:[%s1161_s4 + $0x90] sm:$0xff]  ;;  %v489_v21 = vld [vmem:[%s1161_s4 + $0x8] sm:$0xff] }
  0x65   :  { %529 = vmatpush.msra.mxu2 %v498_v52  ;;  %549 = vmatpush.msra.mxu3 %v514_v53  ;;  %v585_v51 = vld [vmem:[%s1163_s6 + $0x10] sm:$0xff]  ;;  %v586_v52 = vld [vmem:[%s1163_s6 + $0x18] sm:$0xff] }
  0x66   :  { %444 = vmatpush.msra.mxu0 %v418_v22  ;;  %464 = vmatpush.msra.mxu1 %v419_v23  ;;  %v505_v22 = vld [vmem:[%s1161_s4 + $0x88] sm:$0xff]  ;;  %v488_v23 = vld [vmem:[%s1161_s4] sm:$0xff] }
  0x67   :  { %530 = vmatpush.msra.mxu2 %v497_v54  ;;  %550 = vmatpush.msra.mxu3 %v513_v55  ;;  %v637_v53 = vld [vmem:[#allocation8 + $0x10] sm:$0xff]  ;;  %v736_v54 = vld [vmem:[%s1162_s5] ss:$0 sm:$0xff]  ;;  %v636_v55 = vld [vmem:[#allocation8 + $0x8] sm:$0xff]  ;;  %s877_s5 = smov [#allocation10]  }
  0x68   :  { %445 = vmatpush.msra.mxu0 %v416_v24  ;;  %465 = vmatpush.msra.mxu1 %v417_v25  ;;  %v504_v24 = vld [vmem:[%s1161_s4 + $0x80] sm:$0xff]  ;;  %v432_v25 = vld [vmem:[#allocation7] sm:$0x3] }
  0x69   :  { %531 = vmatpush.msra.mxu2 %v496_v57  ;;  %551 = vmatpush.msra.mxu3 %v512_v58  ;;  %v584_v57 = vld [vmem:[%s1163_s6 + $0x8] sm:$0xff]  ;;  %v635_v58 = vld [vmem:[#allocation8] sm:$0xff] }
  0x6a   :  { %446 = vmatpush.msra.mxu0 %v414_v26  ;;  %466 = vmatpush.msra.mxu1 %v415_v27  ;;  %v434_v26 = vperm.slane %v432_v25, 0  ;;  %v435_v27 = vperm.slane %v432_v25, 1 }
  0x6b   :  { %532 = vmatpush.msra.mxu2 %v495_v60  ;;  %552 = vmatpush.msra.mxu3 %v511_v61 }
  0x6c   :  { %447 = vmatpush.msra.mxu0 %v412_v28  ;;  %467 = vmatpush.msra.mxu1 %v413_v29 }
  0x6d   :  { %533 = vmatpush.msra.mxu2 %v494_v11  ;;  %553 = vmatpush.msra.mxu3 %v510_v12 }
  0x6e   :  { %448 = vmatpush.msra.mxu0 %v410_v30  ;;  %468 = vmatpush.msra.mxu1 %v411_v31 }
  0x6f   :  { %534 = vmatpush.msra.mxu2 %v493_v13  ;;  %554 = vmatpush.msra.mxu3 %v509_v14 }
  0x70   :  { %449 = vmatpush.msra.mxu0 %v408_v32  ;;  %469 = vmatpush.msra.mxu1 %v409_v33 }
  0x71   :  { %535 = vmatpush.msra.mxu2 %v492_v15  ;;  %555 = vmatpush.msra.mxu3 %v508_v16 }
  0x72   :  { %450 = vmatpush.msra.mxu0 %v406_v34  ;;  %470 = vmatpush.msra.mxu1 %v407_v35 }
  0x73   :  { %536 = vmatpush.msra.mxu2 %v491_v17  ;;  %556 = vmatpush.msra.mxu3 %v507_v18  ;;  %v685_v17 = vld [vmem:[#allocation2] sm:$0xf] }
  0x74   :  { %451 = vmatpush.msra.mxu0 %v404_v36  ;;  %471 = vmatpush.msra.mxu1 %v405_v37 }
  0x75   :  { %537 = vmatpush.msra.mxu2 %v490_v19  ;;  %557 = vmatpush.msra.mxu3 %v506_v20  ;;  %v694_v20 = vld [vmem:[#allocation2 + $0x4] sm:$0xf] }
  0x76   :  { %452 = vmatpush.msra.mxu0 %v402_v38  ;;  %472 = vmatpush.msra.mxu1 %v403_v39 }
  0x77   :  { %538 = vmatpush.msra.mxu2 %v489_v21  ;;  %558 = vmatpush.msra.mxu3 %v505_v22  ;;  %v697_v21 = vld [vmem:[#allocation2 + $0x8] sm:$0xf]  ;;  %v700_v22 = vld [vmem:[#allocation2 + $0xc] sm:$0xf] }
  0x78   :  { %453 = vmatpush.msra.mxu0 %v400_v40  ;;  %473 = vmatpush.msra.mxu1 %v401_v41 }
  0x79   :  { %539 = vmatpush.msra.mxu2 %v488_v23  ;;  %559 = vmatpush.msra.mxu3 %v504_v24 }
  0x7a   :  { %607 = vmatpush.msrb.mxu0 %v589_v43  ;;  %627 = vmatpush.msrb.mxu1 %v590_v44 }
  0x7b   :  { %675 = vmatpush.msrb.mxu3 %v642_v42  ;;  %655 = vmatpush.msrb.mxu2 %v641_v45 }
  0x7c   :  { %608 = vmatpush.msrb.mxu0 %v587_v47  ;;  %628 = vmatpush.msrb.mxu1 %v588_v48 }
  0x7d   :  { %676 = vmatpush.msrb.mxu3 %v640_v46  ;;  %656 = vmatpush.msrb.mxu2 %v639_v49 }
  0x7e   :  { %609 = vmatpush.msrb.mxu0 %v585_v51  ;;  %629 = vmatpush.msrb.mxu1 %v586_v52 }
  0x7f   :  { %677 = vmatpush.msrb.mxu3 %v638_v50  ;;  %657 = vmatpush.msrb.mxu2 %v637_v53 }
  0x80   :  { %630 = vmatpush.msrb.mxu1 %v584_v57 }
  0x81   :  { %678 = vmatpush.msrb.mxu3 %v636_v55  ;;  %658 = vmatpush.msrb.mxu2 %v635_v58 }
  0xca   :  { %v257_v56 = vpop.f32.mrf.mxu0 }
  0xcd   :  { %v277_v59 = vpop.f32.mrf.mxu1 }
  0xce   :  { %v278_v62 = vadd.f32 %v277_v59, %v257_v56  ;;  %v297_v63 = vpop.f32.mrf.mxu2  ;;  %v583_v56 = vld [vmem:[%s1163_s6] sm:$0xff]  ;;  %s708_s6 = sshll.u32 %s877_s5, 4  ;;  %s709_s6 = int_to_ptr.vmem [resolvable:$true] %s708_s6 }
  0xcf   :  { %610 = vmatpush.msrb.mxu0 %v583_v56 }
  0xd0   :  { %v298_v0 = vadd.f32 %v297_v63, %v278_v62 }
  0xd1   :  { %v317_v1 = vpop.f32.mrf.mxu3 }
  0xd2   :  { %v318_v2 = vadd.f32 %v317_v1, %v298_v0 }
  0xd4   :  { %v337_v3 = vpop.f32.mrf.mxu0 }
  0xd5   :  { %v338_v4 = vadd.f32 %v337_v3, %v318_v2 }
  0xd6   :  { %v357_v5 = vpop.f32.mrf.mxu1 }
  0xd7   :  { %v358_v6 = vadd.f32 %v357_v5, %v338_v4 }
  0xda   :  { %v377_v7 = vpop.f32.mrf.mxu2 }
  0xdb   :  { %v378_v8 = vadd.f32 %v377_v7, %v358_v6 }
  0xdc   :  { %v397_v9 = vpop.f32.mrf.mxu3 }
  0xdd   :  { %v398_v10 = vadd.f32 %v397_v9, %v378_v8 }
  0xdf   :  { %454 = vmatmul.f32.vlgmr.msra.gmra.mxu0 %v398_v10  ;;  %474 = vmatmul.f32.vlgmr.msra.gmra.mxu1 %v398_v10 }
 0x15c   :  { %v455_v28 = vpop.f32.mrf.mxu0  ;;  %v475_v29 = vpop.f32.mrf.mxu1 }
 0x15d   :  { %v456_v30 = vadd.f32 %v455_v28, %v434_v26  ;;  %v476_v31 = vadd.f32 %v475_v29, %v435_v27 }
 0x15f   :  { %v478_v32 = vadd.f32 3.0, %v456_v30  ;;  %v479_v33 = vadd.f32 3.0, %v476_v31 }
 0x161   :  { %v480_v34 = vmax.f32 %v478_v32, 0.0  ;;  %v481_v35 = vmax.f32 %v479_v33, 0.0 }
 0x163   :  { %v482_v36 = vmin.f32 %v480_v34, 6.0  ;;  %v483_v37 = vmin.f32 %v481_v35, 6.0 }
 0x165   :  { %v484_v38 = vmul.f32 %v482_v36, %v456_v30  ;;  %v485_v39 = vmul.f32 %v483_v37, %v476_v31 }
 0x167   :  { %v486_v40 = vmul.f32 0.16666667, %v484_v38  ;;  %v487_v41 = vmul.f32 0.16666667, %v485_v39 }
 0x169   :  { %540 = vmatmul.f32.vlgmr.msra.gmra.mxu2 %v486_v40  ;;  %560 = vmatmul.f32.vlgmr.msra.gmra.mxu3 %v487_v41 }
 0x1ec   :  { %v541_v59 = vpop.f32.mrf.mxu2  ;;  %v561_v61 = vpop.f32.mrf.mxu3 }
 0x1ed   :  { %v542_v60 = vadd.f32 %v736_v54, %v541_v59 }
 0x1ef   :  { %v562_v62 = vadd.f32 %v561_v61, %v542_v60 }
 0x1f1   :  { %v722_v63 = vmul.f32 -1.442695, %v562_v62 }
 0x1f3   :  { %737 = vpow2.f32 %v722_v63 }
 0x1f9   :  { %v738_v0 = vpop.eup %737 }
 0x1fa   :  { %v567_v1 = vadd.f32 1.0, %v738_v0 }
 0x1fc   :  { %739 = vrcp.f32 %v567_v1  ;;  %v579_v5 = vand.u32 2147483648, %v567_v1  ;;  %v577_v7 = vand.u32 2147483647, %v567_v1  ;;  %vm573_vm1 = vweird.f32 %v567_v1 }
 0x1fe   :  { %v580_v9 = vor.u32 1.1754944e-38, %v579_v5  ;;  %vm578_vm4 = vcmp.eq.f32.partialorder %v577_v7, 8.507059e+37 }
 0x202   :  { %v740_v2 = vpop.eup %739 }
 0x203   :  { %v569_v3 = vmul.f32 %v740_v2, %v567_v1  ;;  %vm574_vm0 = vweird.f32 %v740_v2 }
 0x204   :  { %vm575_vm2 = vmor %vm573_vm1, %vm574_vm0 }
 0x205   :  { %v570_v4 = vsub.f32 1.0, %v569_v3 }
 0x207   :  { %v571_v6 = vmul.f32 %v740_v2, %v570_v4 }
 0x209   :  { %v572_v8 = vadd.f32 %v740_v2, %v571_v6 }
 0x20b   :  { %v576_v10 = vsel %vm575_vm2, %v740_v2, %v572_v8 }
 0x20c   :  { %v581_v11 = vsel %vm578_vm4, %v580_v9, %v576_v10 }
 0x20d   :  { %723 = vmatmul.msk.f32.vlgmr.msrb.gmra.mxu0 %vm591_vm3, %v581_v11  ;;  %724 = vmatmul.msk.f32.vlgmr.msrb.gmra.mxu1 %vm591_vm3, %v581_v11 }
 0x20e   :  { %725 = vmatmul.msk.f32.vlgmr.msrb.gmra.mxu2 %vm591_vm3, %v581_v11  ;;  %726 = vmatmul.msk.f32.vlgmr.msrb.gmra.mxu3 %vm591_vm3, %v581_v11 }
 0x28a   :  { %v632_v12 = vpop.f32.mrf.mxu1  ;;  %v612_v16 = vpop.f32.mrf.mxu0 }
 0x291   :  { %v660_v13 = vpop.f32.mrf.mxu2  ;;  %v680_v14 = vpop.f32.mrf.mxu3 }
 0x292   :  { %v684_v15 = vmul.f32 %v680_v14, %v632_v12  ;;  %v683_v18 = vmul.f32 %v660_v13, %v612_v16 }
 0x294   :  { %v688_v19 = vrot.slane %v684_v15, 6 }
 0x296   :  { %v690_v23 = vsel %vm689_vm5, %v683_v18, %v688_v19 }
 0x297   :  { %v692_v24 = vmul.f32 %v690_v23, %v685_v17  ;;  %v695_v25 = vmul.f32 %v694_v20, %v690_v23  ;;  %v698_v26 = vmul.f32 %v697_v21, %v690_v23  ;;  %v701_v27 = vmul.f32 %v700_v22, %v690_v23 }
 0x299   :  { %693 = vst [vmem:[#allocation10] sm:$0xf] %v692_v24 }
 0x29a   :  { %696 = vst [vmem:[#allocation10 + $0x4] sm:$0xf] %v695_v25 }
 0x29b   :  { %699 = vst [vmem:[#allocation10 + $0x8] sm:$0xf] %v698_v26 }
 0x29c   :  { %702 = vst [vmem:[#allocation10 + $0xc] sm:$0xf] %v701_v27 }
 0x29d   :  { %713 = dma.vmem_to_hbm [thread:$0]  %s709_s6, 256, %s711_s17, [#allocation4]  }
 0x29e   :  { %867 = dma.done.wait [#allocation4], 256  }
 0x29f   :  { %868 = vsyncadd [#allocation4], 4294967040 }
 0x2a0   :  { %718 = vsyncpa [#allocation3], 1 }
 0x2a1   :  { %719 = vsyncpa [#allocation6], 1 }
 0x2a2   :  { %720 = vsyncpa [#allocation9], 1 }
 0x2a3   :  { %721 = vsyncpa [#allocation4], 1 }

</bundles_post_ra>
